<compile_context>
chip_gen: v6e
topology: v6e:2x2x1
jax: 0.10.0
libtpu: 0.0.40
codegen_flags: <defaults>
</compile_context>

<pallas_src>
import math

import jax
import jax.numpy as jnp
from jax.experimental import pallas as pl
from jax.experimental.pallas import tpu as pltpu


def _make_kernel(kernel_size, dilation, layers):
    def kernel(x_ref, wc_ref, bc_ref, wlin_ref, bias_ref, o_ref):
        # x_ref   : (F, T, MB)        VMEM  activations, lanes = (batch, node)
        # wc_ref  : (K, MB)           VMEM  per-lane depthwise conv taps
        # bc_ref  : (1, MB)           VMEM  per-lane depthwise conv bias
        # wlin_ref: (F, P_pad, L)     VMEM  w_dl-folded linear weights (L = 9)
        # bias_ref: (P_pad, 1)        VMEM  combined bias (b_lin*sum(w_dl)+b_dl)
        # o_ref   : (P_pad, MB)       VMEM  lane-dense output tile
        f_dim, t_dim, mb = x_ref.shape

        hid = x_ref[...]                      # (F, T, MB) float32
        taps = wc_ref[...]                    # (K, MB)
        bias_c = bc_ref[...]                  # (1, MB)

        # --- stacked depthwise dilated conv + ReLU (shared weights) ---
        length = t_dim
        for _ in range(layers):
            l_out = length - (kernel_size - 1) * dilation
            acc = hid[:, 0:l_out, :] * taps[0][None, :]
            for k in range(1, kernel_size):
                s = k * dilation
                acc = acc + hid[:, s:s + l_out, :] * taps[k][None, :]
            hid = jnp.maximum(acc + bias_c, 0.0)   # single bias add per layer
            length = l_out

        # hid: (F, L=9, MB).  out (P_pad, MB) = sum_f (w_dl_f * W_lin) @ hid[f]
        acc_o = jnp.dot(wlin_ref[0], hid[0], preferred_element_type=jnp.float32)
        for f in range(1, f_dim):
            acc_o = acc_o + jnp.dot(wlin_ref[f], hid[f],
                                    preferred_element_type=jnp.float32)
        o_ref[...] = (acc_o + bias_ref[...]).astype(o_ref.dtype)

    return kernel


def local_conv_model_forward(A, X, params, *, kernel_size=2, dilation=2,
                             layers=3, target_lanes=4096):
    """A is deprecated/unused (pure time-series model). X: (B, N, T, F)."""
    del A
    B, N, T, F = X.shape
    l_final = T - layers * (kernel_size - 1) * dilation
    P, lin_in = params["W_lin"].shape
    assert lin_in == l_final == 9, "Linear(9, P) requires T - layers*(k-1)*dil == 9"
    K = kernel_size
    LANE = 128

    # ---- batch-tile sizing: put BT*N (batch, node) pairs on lanes ----
    total_lanes = B * N
    if total_lanes <= target_lanes:
        bt = B                                   # single lane block (full dims)
    else:
        step = LANE // math.gcd(LANE, N)         # min BT so BT*N % 128 == 0
        bt = max(step, ((target_lanes // N) // step) * step)
    mb = bt * N
    b_pad = -(-B // bt) * bt
    n_blocks = b_pad // bt
    p_pad = ((P + 7) // 8) * 8                   # sublane-dense output tile

    # ---- lane-dense input layout: (F, T, Bp*N), lanes flattened (b, n) ----
    # TODO(synk): the producer could emit X already in (F, T, B, N) layout to
    # avoid this one extra HBM transpose pass (kernel itself is HBM-bound).
    x_r = jnp.transpose(X, (3, 2, 0, 1)).reshape(F, T, B * N).astype(jnp.float32)
    if b_pad != B:
        x_r = jnp.pad(x_r, ((0, 0), (0, 0), (0, (b_pad - B) * N)))

    # per-lane depthwise conv taps / bias, tiled across the batch tile
    wc_nk = params["w_conv"][:, 0, :].astype(jnp.float32)        # (N, K)
    wc_lane = jnp.tile(wc_nk.T, (1, bt))                         # (K, MB)
    bc_lane = jnp.tile(params["b_conv"].astype(jnp.float32), (bt,))[None, :]  # (1, MB)

    # fold the 1x1 feature-mix conv into the linear weight; combine biases
    wd = params["w_dl"].reshape(F).astype(jnp.float32)
    wl = params["W_lin"].astype(jnp.float32)                     # (P, 9)
    wlin = wd[:, None, None] * wl[None, :, :]                    # (F, P, 9)
    wlin = jnp.pad(wlin, ((0, 0), (0, p_pad - P), (0, 0)))       # (F, P_pad, 9)
    b_comb = (params["b_lin"].astype(jnp.float32) * jnp.sum(wd)
              + params["b_dl"].astype(jnp.float32)[0])           # (P,)
    b_comb = jnp.pad(b_comb, (0, p_pad - P)).reshape(p_pad, 1)   # (P_pad, 1)

    kernel = _make_kernel(kernel_size, dilation, layers)
    out = pl.pallas_call(
        kernel,
        out_shape=jax.ShapeDtypeStruct((p_pad, b_pad * N), jnp.float32),
        grid=(n_blocks,),
        in_specs=[
            pl.BlockSpec((F, T, mb), lambda i: (0, 0, i)),
            pl.BlockSpec((K, mb), lambda i: (0, 0)),
            pl.BlockSpec((1, mb), lambda i: (0, 0)),
            pl.BlockSpec((F, p_pad, l_final), lambda i: (0, 0, 0)),
            pl.BlockSpec((p_pad, 1), lambda i: (0, 0)),
        ],
        out_specs=pl.BlockSpec((p_pad, mb), lambda i: (0, i)),
        compiler_params=pltpu.CompilerParams(dimension_semantics=("parallel",)),
    )(x_r, wc_lane, bc_lane, wlin, b_comb)

    # tiny post-hoc re-layout: (P_pad, Bp*N) -> (B, N, P)
    out = out[:P, : B * N].reshape(P, B, N)
    return jnp.transpose(out, (1, 2, 0))


def ref_forward(X, params, kernel_size, dilation, layers):
    """Pure-JAX mirror of the PyTorch forward (for validation)."""
    B, N, T, F = X.shape
    wc = params["w_conv"]                                  # (N, 1, K)
    bc = params["b_conv"]                                  # (N,)
    seq = jnp.transpose(X, (0, 3, 2, 1)).reshape(B * F, T, N)
    h = seq
    for _ in range(layers):
        L = h.shape[1]
        Lo = L - (kernel_size - 1) * dilation
        acc = jnp.zeros((B * F, Lo, N), jnp.float32) + bc[None, None, :]
        for k in range(kernel_size):
            s = k * dilation
            acc = acc + h[:, s:s + Lo, :] * wc[:, 0, k][None, None, :]
        h = jnp.maximum(acc, 0.0)
    P = params["W_lin"].shape[0]
    h2 = jnp.transpose(h, (0, 2, 1)).reshape(B * F * N, -1)
    lin = h2 @ params["W_lin"].T + params["b_lin"]
    lin = lin.reshape(B, F, N, P).transpose(0, 1, 3, 2)     # (B, F, P, N)
    out = jnp.einsum("f,bfpn->bpn", params["w_dl"], lin) + params["b_dl"][0]
    return jnp.transpose(out, (0, 2, 1))                    # (B, N, P)


if __name__ == "__main__":
    # small shapes consistent with the module (T=15 forced by Linear(in=9))
    B, N, T, F, P = 2, 4, 15, 3, 4
    KSIZE, DIL, LAYERS = 2, 2, 3

    key = jax.random.PRNGKey(0)
    ks = jax.random.split(key, 8)
    params = dict(
        w_conv=jax.random.normal(ks[0], (N, 1, KSIZE), jnp.float32) * 0.5,  # Conv1d weight
        b_conv=jax.random.normal(ks[1], (N,), jnp.float32) * 0.1,           # Conv1d bias
        W_lin=jax.random.normal(ks[2], (P, 9), jnp.float32) * 0.3,          # Linear weight
        b_lin=jax.random.normal(ks[3], (P,), jnp.float32) * 0.1,            # Linear bias
        w_dl=jax.random.normal(ks[4], (F,), jnp.float32) * 0.5,             # Conv2d 1x1 weight
        b_dl=jax.random.normal(ks[5], (1,), jnp.float32) * 0.1,             # Conv2d 1x1 bias
    )
    A = jnp.eye(N, dtype=jnp.float32)  # deprecated in the pure TS model (unused)

    # --- small batch: single lane block ---
    X = jax.random.normal(ks[6], (B, N, T, F), jnp.float32)
    out = local_conv_model_forward(A, X, params,
                                   kernel_size=KSIZE, dilation=DIL, layers=LAYERS)
    out = jax.block_until_ready(out)
    ref = ref_forward(X, params, KSIZE, DIL, LAYERS)
    assert out.shape == (B, N, P), out.shape
    err = float(jnp.max(jnp.abs(out - ref)))
    assert err < 1e-2, f"max abs err {err}"

    # --- larger batch: exercises the multi-block grid + lane-padding path ---
    B2 = 1029
    X2 = jax.random.normal(ks[7], (B2, N, T, F), jnp.float32)
    out2 = jax.block_until_ready(
        local_conv_model_forward(A, X2, params,
                                 kernel_size=KSIZE, dilation=DIL, layers=LAYERS))
    ref2 = ref_forward(X2, params, KSIZE, DIL, LAYERS)
    assert out2.shape == (B2, N, P), out2.shape
    err2 = float(jnp.max(jnp.abs(out2 - ref2)))
    assert err2 < 1e-2, f"max abs err {err2}"

    print("KERNEL_OK")
</pallas_src>

<mosaic_0001>
module attributes {stable_mosaic.version = 11 : i64} {
  func.func @kernel(%arg0: i32, %arg1: memref<3x15x8xf32, #tpu.memory_space<vmem>>, %arg2: memref<2x8xf32, #tpu.memory_space<vmem>>, %arg3: memref<1x8xf32, #tpu.memory_space<vmem>>, %arg4: memref<3x8x9xf32, #tpu.memory_space<vmem>>, %arg5: memref<8x1xf32, #tpu.memory_space<vmem>>, %arg6: memref<8x8xf32, #tpu.memory_space<vmem>>) attributes {dimension_semantics = [#tpu.dimension_semantics<parallel>], iteration_bounds = array<i64: 1>, scalar_prefetch = 0 : i64, scratch_operands = 0 : i64, tpu.core_type = #tpu.core_type<tc>, window_params = [{transform_indices = @transform_0, window_bounds = array<i64: 3, 15, 8>}, {pipeline_mode = #tpu.pipeline_mode<synchronous>, transform_indices = @transform_1, window_bounds = array<i64: 2, 8>}, {pipeline_mode = #tpu.pipeline_mode<synchronous>, transform_indices = @transform_2, window_bounds = array<i64: 1, 8>}, {pipeline_mode = #tpu.pipeline_mode<synchronous>, transform_indices = @transform_3, window_bounds = array<i64: 3, 8, 9>}, {pipeline_mode = #tpu.pipeline_mode<synchronous>, transform_indices = @transform_4, window_bounds = array<i64: 8, 1>}, {transform_indices = @transform_5, window_bounds = array<i64: 8, 8>}]} {
    %c0 = arith.constant 0 : index
    %c0_0 = arith.constant 0 : index
    %c0_1 = arith.constant 0 : index
    %0 = vector.load %arg1[%c0, %c0_0, %c0_1] : memref<3x15x8xf32, #tpu.memory_space<vmem>>, vector<3x15x8xf32>
    %c0_2 = arith.constant 0 : index
    %c0_3 = arith.constant 0 : index
    %1 = vector.load %arg2[%c0_2, %c0_3] : memref<2x8xf32, #tpu.memory_space<vmem>>, vector<2x8xf32>
    %c0_4 = arith.constant 0 : index
    %c0_5 = arith.constant 0 : index
    %2 = vector.load %arg3[%c0_4, %c0_5] : memref<1x8xf32, #tpu.memory_space<vmem>>, vector<1x8xf32>
    %3 = vector.extract_strided_slice %0 {offsets = [0, 0, 0], sizes = [3, 13, 8], strides = [1, 1, 1]} : vector<3x15x8xf32> to vector<3x13x8xf32>
    %4 = vector.extract_strided_slice %1 {offsets = [0, 0], sizes = [1, 8], strides = [1, 1]} : vector<2x8xf32> to vector<1x8xf32>
    %5 = vector.shape_cast %4 : vector<1x8xf32> to vector<8xf32>
    %6 = vector.shape_cast %5 : vector<8xf32> to vector<1x8xf32>
    %7 = vector.shape_cast %6 : vector<1x8xf32> to vector<1x1x8xf32>
    %8 = vector.broadcast %7 : vector<1x1x8xf32> to vector<3x13x8xf32>
    %9 = arith.mulf %3, %8 : vector<3x13x8xf32>
    %10 = vector.extract_strided_slice %0 {offsets = [0, 2, 0], sizes = [3, 13, 8], strides = [1, 1, 1]} : vector<3x15x8xf32> to vector<3x13x8xf32>
    %11 = vector.extract_strided_slice %1 {offsets = [1, 0], sizes = [1, 8], strides = [1, 1]} : vector<2x8xf32> to vector<1x8xf32>
    %12 = vector.shape_cast %11 : vector<1x8xf32> to vector<8xf32>
    %13 = vector.shape_cast %12 : vector<8xf32> to vector<1x8xf32>
    %14 = vector.shape_cast %13 : vector<1x8xf32> to vector<1x1x8xf32>
    %15 = vector.broadcast %14 : vector<1x1x8xf32> to vector<3x13x8xf32>
    %16 = arith.mulf %10, %15 : vector<3x13x8xf32>
    %17 = arith.addf %9, %16 : vector<3x13x8xf32>
    %18 = vector.shape_cast %2 : vector<1x8xf32> to vector<1x1x8xf32>
    %19 = vector.broadcast %18 : vector<1x1x8xf32> to vector<3x13x8xf32>
    %20 = arith.addf %17, %19 : vector<3x13x8xf32>
    %cst = arith.constant 0.000000e+00 : f32
    %21 = vector.broadcast %cst : f32 to vector<3x13x8xf32>
    %22 = arith.maximumf %20, %21 : vector<3x13x8xf32>
    %23 = vector.extract_strided_slice %22 {offsets = [0, 0, 0], sizes = [3, 11, 8], strides = [1, 1, 1]} : vector<3x13x8xf32> to vector<3x11x8xf32>
    %24 = vector.extract_strided_slice %1 {offsets = [0, 0], sizes = [1, 8], strides = [1, 1]} : vector<2x8xf32> to vector<1x8xf32>
    %25 = vector.shape_cast %24 : vector<1x8xf32> to vector<8xf32>
    %26 = vector.shape_cast %25 : vector<8xf32> to vector<1x8xf32>
    %27 = vector.shape_cast %26 : vector<1x8xf32> to vector<1x1x8xf32>
    %28 = vector.broadcast %27 : vector<1x1x8xf32> to vector<3x11x8xf32>
    %29 = arith.mulf %23, %28 : vector<3x11x8xf32>
    %30 = vector.extract_strided_slice %22 {offsets = [0, 2, 0], sizes = [3, 11, 8], strides = [1, 1, 1]} : vector<3x13x8xf32> to vector<3x11x8xf32>
    %31 = vector.extract_strided_slice %1 {offsets = [1, 0], sizes = [1, 8], strides = [1, 1]} : vector<2x8xf32> to vector<1x8xf32>
    %32 = vector.shape_cast %31 : vector<1x8xf32> to vector<8xf32>
    %33 = vector.shape_cast %32 : vector<8xf32> to vector<1x8xf32>
    %34 = vector.shape_cast %33 : vector<1x8xf32> to vector<1x1x8xf32>
    %35 = vector.broadcast %34 : vector<1x1x8xf32> to vector<3x11x8xf32>
    %36 = arith.mulf %30, %35 : vector<3x11x8xf32>
    %37 = arith.addf %29, %36 : vector<3x11x8xf32>
    %38 = vector.shape_cast %2 : vector<1x8xf32> to vector<1x1x8xf32>
    %39 = vector.broadcast %38 : vector<1x1x8xf32> to vector<3x11x8xf32>
    %40 = arith.addf %37, %39 : vector<3x11x8xf32>
    %cst_6 = arith.constant 0.000000e+00 : f32
    %41 = vector.broadcast %cst_6 : f32 to vector<3x11x8xf32>
    %42 = arith.maximumf %40, %41 : vector<3x11x8xf32>
    %43 = vector.extract_strided_slice %42 {offsets = [0, 0, 0], sizes = [3, 9, 8], strides = [1, 1, 1]} : vector<3x11x8xf32> to vector<3x9x8xf32>
    %44 = vector.extract_strided_slice %1 {offsets = [0, 0], sizes = [1, 8], strides = [1, 1]} : vector<2x8xf32> to vector<1x8xf32>
    %45 = vector.shape_cast %44 : vector<1x8xf32> to vector<8xf32>
    %46 = vector.shape_cast %45 : vector<8xf32> to vector<1x8xf32>
    %47 = vector.shape_cast %46 : vector<1x8xf32> to vector<1x1x8xf32>
    %48 = vector.broadcast %47 : vector<1x1x8xf32> to vector<3x9x8xf32>
    %49 = arith.mulf %43, %48 : vector<3x9x8xf32>
    %50 = vector.extract_strided_slice %42 {offsets = [0, 2, 0], sizes = [3, 9, 8], strides = [1, 1, 1]} : vector<3x11x8xf32> to vector<3x9x8xf32>
    %51 = vector.extract_strided_slice %1 {offsets = [1, 0], sizes = [1, 8], strides = [1, 1]} : vector<2x8xf32> to vector<1x8xf32>
    %52 = vector.shape_cast %51 : vector<1x8xf32> to vector<8xf32>
    %53 = vector.shape_cast %52 : vector<8xf32> to vector<1x8xf32>
    %54 = vector.shape_cast %53 : vector<1x8xf32> to vector<1x1x8xf32>
    %55 = vector.broadcast %54 : vector<1x1x8xf32> to vector<3x9x8xf32>
    %56 = arith.mulf %50, %55 : vector<3x9x8xf32>
    %57 = arith.addf %49, %56 : vector<3x9x8xf32>
    %58 = vector.shape_cast %2 : vector<1x8xf32> to vector<1x1x8xf32>
    %59 = vector.broadcast %58 : vector<1x1x8xf32> to vector<3x9x8xf32>
    %60 = arith.addf %57, %59 : vector<3x9x8xf32>
    %cst_7 = arith.constant 0.000000e+00 : f32
    %61 = vector.broadcast %cst_7 : f32 to vector<3x9x8xf32>
    %62 = arith.maximumf %60, %61 : vector<3x9x8xf32>
    %c0_8 = arith.constant 0 : index
    %c0_9 = arith.constant 0 : index
    %c0_10 = arith.constant 0 : index
    %63 = vector.load %arg4[%c0_8, %c0_9, %c0_10] : memref<3x8x9xf32, #tpu.memory_space<vmem>>, vector<1x8x9xf32>
    %64 = vector.shape_cast %63 : vector<1x8x9xf32> to vector<8x9xf32>
    %65 = vector.extract_strided_slice %62 {offsets = [0, 0, 0], sizes = [1, 9, 8], strides = [1, 1, 1]} : vector<3x9x8xf32> to vector<1x9x8xf32>
    %66 = vector.shape_cast %65 : vector<1x9x8xf32> to vector<9x8xf32>
    %cst_11 = arith.constant dense<0.000000e+00> : vector<8x8xf32>
    %67 = tpu.matmul %64, %66, %cst_11 {dimension_numbers = #tpu.dot_dimension_numbers<[1], [0], [0], [1], [0, 0, 1, 1], [], []>} : vector<8x9xf32>, vector<9x8xf32>, vector<8x8xf32> -> vector<8x8xf32>
    %c1 = arith.constant 1 : index
    %c0_12 = arith.constant 0 : index
    %c0_13 = arith.constant 0 : index
    %68 = vector.load %arg4[%c1, %c0_12, %c0_13] : memref<3x8x9xf32, #tpu.memory_space<vmem>>, vector<1x8x9xf32>
    %69 = vector.shape_cast %68 : vector<1x8x9xf32> to vector<8x9xf32>
    %70 = vector.extract_strided_slice %62 {offsets = [1, 0, 0], sizes = [1, 9, 8], strides = [1, 1, 1]} : vector<3x9x8xf32> to vector<1x9x8xf32>
    %71 = vector.shape_cast %70 : vector<1x9x8xf32> to vector<9x8xf32>
    %cst_14 = arith.constant dense<0.000000e+00> : vector<8x8xf32>
    %72 = tpu.matmul %69, %71, %cst_14 {dimension_numbers = #tpu.dot_dimension_numbers<[1], [0], [0], [1], [0, 0, 1, 1], [], []>} : vector<8x9xf32>, vector<9x8xf32>, vector<8x8xf32> -> vector<8x8xf32>
    %73 = arith.addf %67, %72 : vector<8x8xf32>
    %c2 = arith.constant 2 : index
    %c0_15 = arith.constant 0 : index
    %c0_16 = arith.constant 0 : index
    %74 = vector.load %arg4[%c2, %c0_15, %c0_16] : memref<3x8x9xf32, #tpu.memory_space<vmem>>, vector<1x8x9xf32>
    %75 = vector.shape_cast %74 : vector<1x8x9xf32> to vector<8x9xf32>
    %76 = vector.extract_strided_slice %62 {offsets = [2, 0, 0], sizes = [1, 9, 8], strides = [1, 1, 1]} : vector<3x9x8xf32> to vector<1x9x8xf32>
    %77 = vector.shape_cast %76 : vector<1x9x8xf32> to vector<9x8xf32>
    %cst_17 = arith.constant dense<0.000000e+00> : vector<8x8xf32>
    %78 = tpu.matmul %75, %77, %cst_17 {dimension_numbers = #tpu.dot_dimension_numbers<[1], [0], [0], [1], [0, 0, 1, 1], [], []>} : vector<8x9xf32>, vector<9x8xf32>, vector<8x8xf32> -> vector<8x8xf32>
    %79 = arith.addf %73, %78 : vector<8x8xf32>
    %c0_18 = arith.constant 0 : index
    %c0_19 = arith.constant 0 : index
    %80 = vector.load %arg5[%c0_18, %c0_19] : memref<8x1xf32, #tpu.memory_space<vmem>>, vector<8x1xf32>
    %81 = vector.broadcast %80 : vector<8x1xf32> to vector<8x8xf32>
    %82 = arith.addf %79, %81 : vector<8x8xf32>
    %c0_20 = arith.constant 0 : index
    %c0_21 = arith.constant 0 : index
    %83 = vector.load %arg6[%c0_20, %c0_21] : memref<8x8xf32, #tpu.memory_space<vmem>>, vector<8x8xf32>
    tpu.vector_store %arg6[%c0_20, %c0_21], %82 {strides = array<i32>} : memref<8x8xf32, #tpu.memory_space<vmem>>, vector<8x8xf32>,
    return
  }
  func.func @transform_0(%arg0: i32) -> (i32, i32, i32) {
    %c0_i32 = arith.constant 0 : i32
    %c0_i32_0 = arith.constant 0 : i32
    %c0_i32_1 = arith.constant 0 : i32
    return %c0_i32, %c0_i32_0, %arg0 : i32, i32, i32
  }
  func.func @transform_1(%arg0: i32) -> (i32, i32) {
    %c0_i32 = arith.constant 0 : i32
    %c0_i32_0 = arith.constant 0 : i32
    %c0_i32_1 = arith.constant 0 : i32
    return %c0_i32, %c0_i32_0 : i32, i32
  }
  func.func @transform_2(%arg0: i32) -> (i32, i32) {
    %c0_i32 = arith.constant 0 : i32
    %c0_i32_0 = arith.constant 0 : i32
    %c0_i32_1 = arith.constant 0 : i32
    return %c0_i32, %c0_i32_0 : i32, i32
  }
  func.func @transform_3(%arg0: i32) -> (i32, i32, i32) {
    %c0_i32 = arith.constant 0 : i32
    %c0_i32_0 = arith.constant 0 : i32
    %c0_i32_1 = arith.constant 0 : i32
    %c0_i32_2 = arith.constant 0 : i32
    return %c0_i32, %c0_i32_0, %c0_i32_1 : i32, i32, i32
  }
  func.func @transform_4(%arg0: i32) -> (i32, i32) {
    %c0_i32 = arith.constant 0 : i32
    %c0_i32_0 = arith.constant 0 : i32
    %c0_i32_1 = arith.constant 0 : i32
    return %c0_i32, %c0_i32_0 : i32, i32
  }
  func.func @transform_5(%arg0: i32) -> (i32, i32) {
    %c0_i32 = arith.constant 0 : i32
    %c0_i32_0 = arith.constant 0 : i32
    return %c0_i32, %arg0 : i32, i32
  }
}

</mosaic_0001>

<bundles_post_ra>
// kernel: tpu_custom_call.1
= control target key start
LH: loop header
LB: loop body
LE: loop exit
PB: predicated region body
PF: predicated region fallthrough
CT: control target
= control target key end

     0   :  { %v29_v0 = vlaneseq  ;;  %v522_v1 = vmov 0.0   ;;  %vm523_vm0 = vmmov 0   ;;  %v524_v6 = vmov 0   ;;  %s682_s0 = inlined_call_operand.vmem [shape: f32[3,15,8], index: 0, kind: input, shape index: {}]   ;;  %s683_s1 = inlined_call_operand.vmem [shape: f32[2,8], index: 1, kind: input, shape index: {}]   ;;  %s684_s2 = inlined_call_operand.vmem [shape: f32[1,8], index: 2, kind: input, shape index: {}]   ;;  %s685_s3 = inlined_call_operand.vmem [shape: f32[3,8,9], index: 3, kind: input, shape index: {}]   ;;  %s686_s4 = inlined_call_operand.vmem [shape: f32[8,1], index: 4, kind: input, shape index: {}]   ;;  %s687_s5 = inlined_call_operand.hbm [shape: f32[8,8], index: 5, kind: output, shape index: {}]  }
   0x1   :  { %474 = vmatprep.subr.mxu0 %v522_v1  ;;  %481 = vmatprep.subr.mxu1 %v522_v1  ;;  %v27_v3 = vld [vmem:[%s683_s1] sm:$0x3] }
   0x2   :  { %v30_v2 = vshrl.u32 %v29_v0, 7  ;;  %478 = vmatprep.mubr.msk.f32.mxu0 %vm523_vm0, %v522_v1  ;;  %485 = vmatprep.mubr.msk.f32.mxu1 %vm523_vm0, %v522_v1  ;;  %v433_v7 = vld [vmem:[%s686_s4] sm:$0xff] }
   0x3   :  { %499 = vset.pattern.permute.xlu0 %v524_v6 }
   0x4   :  { %v31_v4 = vsub.s32 0, %v30_v2  ;;  %v41_v5 = vsub.s32 1, %v30_v2 }
   0x5   :  { %10 = vsyncpa [#allocation3], 0  ;;  %v24_v8 = vld [vmem:[%s682_s0 + $0x18] sm:$0x7f]  ;;  %v22_v9 = vld [vmem:[%s682_s0 + $0x8] sm:$0x7f]  ;;  %436 = vperm.xlu0 %499, %v433_v7  }
   0x6   :  { %v574_v10 = vrot.slane %v27_v3, %v31_v4  ;;  %v576_v11 = vrot.slane %v27_v3, %v41_v5  ;;  %v23_v12 = vld [vmem:[%s682_s0 + $0x10] sm:$0xff]  ;;  %v21_v13 = vld [vmem:[%s682_s0] sm:$0xff]  ;;  %v26_v14 = vld [vmem:[%s682_s0 + $0x28] sm:$0x7f]  ;;  %vm55_vm1 = vcmask 1045504   ;;  %vm204_vm2 = vcmask 1040384  }
   0x7   :  { %v25_v19 = vld [vmem:[%s682_s0 + $0x20] sm:$0xff]  ;;  %vm200_vm3 = vcmask 72704   ;;  %s525_s13 = smov [#allocation2]   ;;  %vm440_vm4 = vcmask 64512  }
   0x8   :  { %v36_v15 = vmul.f32 %v574_v10, %v24_v8  ;;  %v46_v16 = vmul.f32 %v576_v11, %v24_v8  ;;  %v34_v17 = vmul.f32 %v574_v10, %v22_v9  ;;  %v44_v18 = vmul.f32 %v576_v11, %v22_v9  ;;  %v602_v27 = vld [vmem:[%s684_s2] ss:$0 sm:$0xff]  ;;  %s448_s14 = sshll.u32 %s525_s13, 4  ;;  %s449_s14 = int_to_ptr.vmem [resolvable:$true] %s448_s14 }
   0x9   :  { %v35_v20 = vmul.f32 %v574_v10, %v23_v12  ;;  %v45_v21 = vmul.f32 %v576_v11, %v23_v12  ;;  %v43_v22 = vmul.f32 %v576_v11, %v21_v13  ;;  %v33_v25 = vmul.f32 %v574_v10, %v21_v13  ;;  %p505_p1 = scmp.lt.s32.totalorder %s449_s14, %s449_s14 }
   0xa   :  { %v60_v23 = vrot.slane %v46_v16, 2  ;;  %v57_v24 = vrot.slane %v44_v18, 2  ;;  %v48_v26 = vmul.f32 %v576_v11, %v26_v14  ;;  %v38_v30 = vmul.f32 %v574_v10, %v26_v14 }
   0xb   :  { %v59_v28 = vrot.slane %v45_v21, 2  ;;  %v56_v29 = vrot.slane %v43_v22, 2  ;;  %v47_v31 = vmul.f32 %v576_v11, %v25_v19  ;;  %v37_v37 = vmul.f32 %v574_v10, %v25_v19 }
   0xc   :  { %v74_v32 = vadd.f32 %v60_v23, %v36_v15  ;;  %v72_v33 = vadd.f32 %v57_v24, %v34_v17  ;;  %v63_v34 = vrot.slane %v48_v26, 2 }
   0xd   :  { %v61_v35 = vsel %vm55_vm1, %v59_v28, %v60_v23  ;;  %v58_v36 = vsel %vm55_vm1, %v56_v29, %v57_v24  ;;  %v62_v38 = vrot.slane %v47_v31, 2 }
   0xe   :  { %v86_v39 = vadd.f32 %v602_v27, %v74_v32  ;;  %v84_v40 = vadd.f32 %v602_v27, %v72_v33  ;;  %v73_v41 = vadd.f32 %v61_v35, %v35_v20  ;;  %v71_v42 = vadd.f32 %v58_v36, %v33_v25 }
   0xf   :  { %v76_v43 = vadd.f32 %v63_v34, %v38_v30  ;;  %v64_v44 = vsel %vm55_vm1, %v62_v38, %v63_v34 }
  0x10   :  { %v92_v45 = vmax.f32 %v86_v39, 0.0  ;;  %v90_v46 = vmax.f32 %v84_v40, 0.0  ;;  %v85_v47 = vadd.f32 %v602_v27, %v73_v41  ;;  %v83_v48 = vadd.f32 %v602_v27, %v71_v42 }
  0x11   :  { %v88_v49 = vadd.f32 %v602_v27, %v76_v43  ;;  %v75_v50 = vadd.f32 %v64_v44, %v37_v37 }
  0x12   :  { %v98_v51 = vmul.f32 %v92_v45, %v574_v10  ;;  %v104_v52 = vmul.f32 %v92_v45, %v576_v11  ;;  %v96_v53 = vmul.f32 %v90_v46, %v574_v10  ;;  %v102_v54 = vmul.f32 %v90_v46, %v576_v11 }
  0x13   :  { %v91_v55 = vmax.f32 %v85_v47, 0.0  ;;  %v89_v56 = vmax.f32 %v83_v48, 0.0  ;;  %v94_v57 = vmax.f32 %v88_v49, 0.0  ;;  %v87_v58 = vadd.f32 %v602_v27, %v75_v50 }
  0x14   :  { %v117_v59 = vrot.slane %v104_v52, 2  ;;  %v114_v60 = vrot.slane %v102_v54, 2 }
  0x15   :  { %v97_v61 = vmul.f32 %v91_v55, %v574_v10  ;;  %v103_v62 = vmul.f32 %v91_v55, %v576_v11  ;;  %v101_v63 = vmul.f32 %v89_v56, %v576_v11  ;;  %v95_v3 = vmul.f32 %v89_v56, %v574_v10 }
  0x16   :  { %v131_v0 = vadd.f32 %v117_v59, %v98_v51  ;;  %v129_v2 = vadd.f32 %v114_v60, %v96_v53  ;;  %v106_v4 = vmul.f32 %v94_v57, %v576_v11  ;;  %v100_v7 = vmul.f32 %v94_v57, %v574_v10 }
  0x17   :  { %v116_v5 = vrot.slane %v103_v62, 2  ;;  %v113_v6 = vrot.slane %v101_v63, 2  ;;  %v93_v8 = vmax.f32 %v87_v58, 0.0 }
  0x18   :  { %v137_v9 = vadd.f32 %v602_v27, %v131_v0  ;;  %v135_v12 = vadd.f32 %v602_v27, %v129_v2  ;;  %v120_v13 = vrot.slane %v106_v4, 2  ;;  %v457_v4 = vld [vmem:[%s685_s3 + $0x8] sm:$0xff] }
  0x19   :  { %v118_v14 = vsel %vm55_vm1, %v116_v5, %v117_v59  ;;  %v115_v15 = vsel %vm55_vm1, %v113_v6, %v114_v60  ;;  %v99_v16 = vmul.f32 %v93_v8, %v574_v10  ;;  %v105_v17 = vmul.f32 %v93_v8, %v576_v11  ;;  %v197_v8 = vld [vmem:[%s685_s3] sm:$0xff] }
  0x1a   :  { %v143_v18 = vmax.f32 %v137_v9, 0.0  ;;  %v141_v19 = vmax.f32 %v135_v12, 0.0  ;;  %v130_v20 = vadd.f32 %v118_v14, %v97_v61  ;;  %v128_v21 = vadd.f32 %v115_v15, %v95_v3 }
  0x1b   :  { %v133_v22 = vadd.f32 %v120_v13, %v100_v7  ;;  %v119_v23 = vrot.slane %v105_v17, 2 }
  0x1c   :  { %v149_v24 = vmul.f32 %v143_v18, %v574_v10  ;;  %v155_v25 = vmul.f32 %v143_v18, %v576_v11  ;;  %v147_v26 = vmul.f32 %v141_v19, %v574_v10  ;;  %v153_v28 = vmul.f32 %v141_v19, %v576_v11 }
  0x1d   :  { %v136_v29 = vadd.f32 %v602_v27, %v130_v20  ;;  %v134_v30 = vadd.f32 %v602_v27, %v128_v21  ;;  %v139_v31 = vadd.f32 %v602_v27, %v133_v22  ;;  %v121_v32 = vsel %vm55_vm1, %v119_v23, %v120_v13  ;;  %v462_v13 = vld [vmem:[%s685_s3 + $0x10] sm:$0xff]  ;;  %s500_s3 = scalar_lea.vmem %s449_s14, 128 }
  0x1e   :  { %v168_v33 = vrot.slane %v155_v25, 2  ;;  %v165_v34 = vrot.slane %v153_v28, 2  ;;  %v132_v35 = vadd.f32 %v121_v32, %v99_v16  ;;  %p501_p0 = scmp.ne.s32.totalorder %s449_s14, %s500_s3  ;;  %p506_p2 = scmp.lt.s32.totalorder %s500_s3, %s500_s3 }
  0x1f   :  { %v142_v36 = vmax.f32 %v136_v29, 0.0  ;;  %v140_v37 = vmax.f32 %v134_v30, 0.0  ;;  %v145_v38 = vmax.f32 %v139_v31, 0.0 }
  0x20   :  { %v182_v39 = vadd.f32 %v168_v33, %v149_v24  ;;  %v180_v40 = vadd.f32 %v165_v34, %v147_v26  ;;  %v138_v41 = vadd.f32 %v602_v27, %v132_v35  ;;  %p507_p3 = por %p506_p2, %p505_p1 }
  0x21   :  { %v148_v42 = vmul.f32 %v142_v36, %v574_v10  ;;  %v154_v43 = vmul.f32 %v142_v36, %v576_v11  ;;  %v146_v44 = vmul.f32 %v140_v37, %v574_v10  ;;  %v152_v45 = vmul.f32 %v140_v37, %v576_v11 }
  0x22   :  { %v188_v46 = vadd.f32 %v602_v27, %v182_v39  ;;  %v186_v47 = vadd.f32 %v602_v27, %v180_v40  ;;  %v151_v48 = vmul.f32 %v145_v38, %v574_v10  ;;  %v157_v49 = vmul.f32 %v145_v38, %v576_v11  ;;  %p508_p4 = pnand %p507_p3, %p501_p0 }
  0x23   :  { %v167_v50 = vrot.slane %v154_v43, 2  ;;  %v164_v51 = vrot.slane %v152_v45, 2  ;;  %v144_v52 = vmax.f32 %v138_v41, 0.0 }
  0x24   :  { %v194_v53 = vmax.f32 %v188_v46, 0.0  ;;  %v192_v54 = vmax.f32 %v186_v47, 0.0  ;;  %v171_v55 = vrot.slane %v157_v49, 2 }
  0x25   :  { %v169_v56 = vsel %vm55_vm1, %v167_v50, %v168_v33  ;;  %v166_v57 = vsel %vm55_vm1, %v164_v51, %v165_v34  ;;  %v150_v58 = vmul.f32 %v144_v52, %v574_v10  ;;  %v156_v59 = vmul.f32 %v144_v52, %v576_v11 }
  0x26   :  { %475 = vmatpush3.msk.msra.mxu0 %vm204_vm2, %v194_v53  ;;  %482 = vmatpush3.msk.msra.mxu1 %vm204_vm2, %v192_v54  ;;  %v181_v60 = vadd.f32 %v169_v56, %v148_v42  ;;  %v179_v61 = vadd.f32 %v166_v57, %v146_v44  ;;  %v184_v62 = vadd.f32 %v171_v55, %v151_v48 }
  0x27   :  { %476 = vmatprep.subr.mxu0 %v522_v1  ;;  %483 = vmatprep.subr.mxu1 %v522_v1  ;;  %v170_v63 = vrot.slane %v156_v59, 2 }
  0x28   :  { %v187_v0 = vadd.f32 %v602_v27, %v181_v60  ;;  %v185_v2 = vadd.f32 %v602_v27, %v179_v61  ;;  %v190_v10 = vadd.f32 %v602_v27, %v184_v62 }
  0x29   :  { %v172_v11 = vsel %vm55_vm1, %v170_v63, %v171_v55 }
  0x2a   :  { %v193_v3 = vmax.f32 %v187_v0, 0.0  ;;  %v191_v5 = vmax.f32 %v185_v2, 0.0  ;;  %v196_v6 = vmax.f32 %v190_v10, 0.0  ;;  %v183_v7 = vadd.f32 %v172_v11, %v150_v58 }
  0x2c   :  { %477 = vmatpush3.msra.mxu0 %v193_v3  ;;  %484 = vmatpush3.msra.mxu1 %v191_v5  ;;  %v189_v9 = vadd.f32 %v602_v27, %v183_v7 }
  0x2d   :  { %479 = vmatmul.mubr.msk.f32.vlgmr.msra.gmra.mxu0 %vm200_vm3, %v457_v4  ;;  %488 = vmatprep.subr.mxu0 %v522_v1 }
  0x2e   :  { %486 = vmatmul.mubr.msk.f32.vlgmr.msra.gmra.mxu1 %vm200_vm3, %v197_v8  ;;  %489 = vmatpush3.msk.msra.mxu0 %vm204_vm2, %v196_v6  ;;  %v195_v12 = vmax.f32 %v189_v9, 0.0 }
  0x2f   :  { %490 = vmatprep.subr.mxu0 %v522_v1  ;;  %492 = vmatprep.mubr.msk.f32.mxu0 %vm523_vm0, %v522_v1 }
  0x30   :  { %491 = vmatpush3.msra.mxu0 %v195_v12 }
  0x31   :  { %493 = vmatmul.mubr.msk.f32.vlgmr.msra.gmra.mxu0 %vm200_vm3, %v462_v13 }
  0x80   :  { %v437_v19 = vpop.permute.xlu0 %436 }
  0xed   :  { %v274_v27 = vpop.f32.mrf.mxu0 }
  0xee   :  { %v350_v14 = vpop.f32.mrf.mxu1 }
  0xef   :  { %v480_v15 = vpop.f32.mrf.mxu0  ;;  %v351_v16 = vadd.f32 %v350_v14, %v274_v27 }
  0xf0   :  { %v487_v17 = vpop.f32.mrf.mxu1 }
  0xf1   :  { %v428_v18 = vpop.f32.mrf.mxu0 }
  0xf2   :  { %v432_v20 = vadd.f32 %v428_v18, %v351_v16 }
  0xf3   :  { %v494_v21 = vpop.f32.mrf.mxu0 }
  0xf4   :  { %v439_v22 = vadd.f32 %v437_v19, %v432_v20 }
  0xf6   :  { %441 = vst.msk [vmem:[#allocation2] sm:$0xff] %vm440_vm4, %v439_v22 }
  0xf7   :  { %511 = shalt.err (!%p508_p4)
}
  0xf8   :  { %451 = dma.vmem_to_hbm [thread:$0]  %s449_s14, 128, %s687_s5, [#allocation3]  }
  0xf9   :  { %520 = dma.done.wait [#allocation3], 128  }
  0xfa   :  { %521 = vsyncadd [#allocation3], 4294967168 }
  0xfb   :  { %455 = vsyncpa [#allocation3], 1 }

</bundles_post_ra>
